<compile_context>
chip_gen: v7x
topology: tpu7x:2x2x1
jax: 0.10.0
libtpu: 0.0.40
codegen_flags: <defaults>
</compile_context>

<pallas_src>
import jax
import jax.numpy as jnp
from jax.experimental import pallas as pl
from jax.experimental.pallas import tpu as pltpu


def _conv_as_matmul_kernel(x_ref, w_ref, o_ref):
    # x_ref: (M, K_pad)         im2col rows, col K holds 1.0 (bias column)
    # w_ref: (K_pad, Cout_pad)  flattened conv weight, row K holds the bias
    # o_ref: (M, Cout_pad)      lane-dense output (last dim = 128 multiple)
    o_ref[...] = jnp.dot(
        x_ref[...], w_ref[...], preferred_element_type=jnp.float32
    ).astype(o_ref.dtype)


def inp_feat_conv(x_nchw, weight_oihw, bias):
    """Forward pass of InpFeatConv (nn.Conv2d(in_dim, out_dim, 3, padding=1)).

    x_nchw:      (N, Cin, H, W)    float32, PyTorch NCHW layout
    weight_oihw: (Cout, Cin, 3, 3) nn.Conv2d weight layout
    bias:        (Cout,)
    returns:     (N, Cout, H, W)
    """
    N, Cin, H, W = x_nchw.shape
    Cout = weight_oihw.shape[0]
    dtype = x_nchw.dtype

    K = 9 * Cin                                        # true contraction (36)
    K_pad = max(128, ((K + 1 + 127) // 128) * 128)     # room for bias column
    Cout_pad = max(128, ((Cout + 127) // 128) * 128)   # lane-dense output
    M = N * H * W                                      # one long MXU push

    # ---- layout plumbing in plain JAX (fused by XLA under jit) ----
    x_nhwc = jnp.transpose(x_nchw, (0, 2, 3, 1))                   # (N,H,W,Cin)
    x_sp = jnp.pad(x_nhwc, ((0, 0), (1, 1), (1, 1), (0, 0)))       # (N,H+2,W+2,Cin)

    # im2col: 9 shifted views on the channel axis, order (dh, dw, cin);
    # then a ones column (bias) and zero padding out to K_pad lanes.
    cols = [x_sp[:, dh:dh + H, dw:dw + W, :]
            for dh in range(3) for dw in range(3)]
    blocks = cols + [jnp.ones((N, H, W, 1), dtype)]
    tail = K_pad - (K + 1)
    if tail:
        blocks.append(jnp.zeros((N, H, W, tail), dtype))
    x_aug = jnp.concatenate(blocks, axis=-1).reshape(M, K_pad)     # (M, K_pad)

    # weight: OIHW -> (kh, kw, cin, cout) -> (K, Cout); bias as row K;
    # everything else zero so padded output lanes come out exactly zero.
    w_flat = jnp.transpose(weight_oihw, (2, 3, 1, 0)).reshape(K, Cout)
    w_aug = jnp.zeros((K_pad, Cout_pad), dtype)
    w_aug = w_aug.at[:K, :Cout].set(w_flat)
    w_aug = w_aug.at[K, :Cout].set(bias)

    # ---- grid-free Pallas call: whole problem resident in VMEM ----
    out_flat = pl.pallas_call(
        _conv_as_matmul_kernel,
        out_shape=jax.ShapeDtypeStruct((M, Cout_pad), dtype),
        in_specs=[
            pl.BlockSpec(memory_space=pltpu.MemorySpace.VMEM),
            pl.BlockSpec(memory_space=pltpu.MemorySpace.VMEM),
        ],
        out_specs=pl.BlockSpec(memory_space=pltpu.MemorySpace.VMEM),
    )(x_aug, w_aug)

    # Drop padded lanes, restore NCHW.
    out_nhwc = out_flat[:, :Cout].reshape(N, H, W, Cout)
    return jnp.transpose(out_nhwc, (0, 3, 1, 2))


if __name__ == "__main__":
    # Small shapes consistent with the module: N=2, in_dim=4, out_dim=8, 16x16.
    N, Cin, Cout, H, W = 2, 4, 8, 16, 16

    key = jax.random.PRNGKey(0)
    kx, kw, kb = jax.random.split(key, 3)

    x = jax.random.normal(kx, (N, Cin, H, W), dtype=jnp.float32)
    weight = jax.random.normal(kw, (Cout, Cin, 3, 3), dtype=jnp.float32) * 0.1
    bias = jax.random.normal(kb, (Cout,), dtype=jnp.float32) * 0.1

    fn = jax.jit(inp_feat_conv)
    out = jax.block_until_ready(fn(x, weight, bias))

    # Cross-check against XLA's conv (same semantics as torch Conv2d, pad=1).
    ref = jax.lax.conv_general_dilated(
        x, weight, window_strides=(1, 1), padding=((1, 1), (1, 1)),
        dimension_numbers=("NCHW", "OIHW", "NCHW"),
    ) + bias.reshape(1, Cout, 1, 1)
    assert out.shape == (N, Cout, H, W)
    assert jnp.allclose(out, ref, atol=1e-4, rtol=1e-4)

    print("KERNEL_OK")
</pallas_src>

<mosaic_0001>
module attributes {stable_mosaic.version = 11 : i64} {
  func.func @_conv_as_matmul_kernel(%arg0: memref<512x128xf32, #tpu.memory_space<vmem>>, %arg1: memref<128x128xf32, #tpu.memory_space<vmem>>, %arg2: memref<512x128xf32, #tpu.memory_space<vmem>>) attributes {dimension_semantics = [], scalar_prefetch = 0 : i64, scratch_operands = 0 : i64, tpu.core_type = #tpu.core_type<tc>} {
    %c0 = arith.constant 0 : index
    %c0_0 = arith.constant 0 : index
    %0 = vector.load %arg0[%c0, %c0_0] : memref<512x128xf32, #tpu.memory_space<vmem>>, vector<512x128xf32>
    %c0_1 = arith.constant 0 : index
    %c0_2 = arith.constant 0 : index
    %1 = vector.load %arg1[%c0_1, %c0_2] : memref<128x128xf32, #tpu.memory_space<vmem>>, vector<128x128xf32>
    %cst = arith.constant dense<0.000000e+00> : vector<512x128xf32>
    %2 = tpu.matmul %0, %1, %cst {dimension_numbers = #tpu.dot_dimension_numbers<[1], [0], [0], [1], [0, 0, 1, 1], [], []>} : vector<512x128xf32>, vector<128x128xf32>, vector<512x128xf32> -> vector<512x128xf32>
    %c0_3 = arith.constant 0 : index
    %c0_4 = arith.constant 0 : index
    %3 = vector.load %arg2[%c0_3, %c0_4] : memref<512x128xf32, #tpu.memory_space<vmem>>, vector<512x128xf32>
    tpu.vector_store %arg2[%c0_3, %c0_4], %2 {strides = array<i32>} : memref<512x128xf32, #tpu.memory_space<vmem>>, vector<512x128xf32>,
    return
  }
}

</mosaic_0001>

<bundles_post_ra>
// kernel: inp_feat_conv.1
= control target key start
LH: loop header
LB: loop body
LE: loop exit
PB: predicated region body
PF: predicated region fallthrough
CT: control target
= control target key end

     0   :  { %s1247_s1 = inlined_call_operand.vmem [shape: f32[128,128], index: 1, kind: input, shape index: {}]   ;;  %s1248_s0 = inlined_call_operand.vmem [shape: f32[512,128], index: 0, kind: input, shape index: {}]   ;;  %s1249_s2 = inlined_call_operand.vmem [shape: f32[512,128], index: 2, kind: output, shape index: {}]  }
   0x1   :  { %v75_v0 = vld [vmem:[%s1247_s1] sm:$0xff]  ;;  %v76_v1 = vld [vmem:[%s1247_s1 + $0x8] sm:$0xff]  ;;  %v77_v2 = vld [vmem:[%s1247_s1 + $0x10] sm:$0xff] }
   0x2   :  { %v752_v3 = vpack.c.bf16 %v76_v1, %v75_v0  ;;  %v78_v4 = vld [vmem:[%s1247_s1 + $0x18] sm:$0xff]  ;;  %v79_v6 = vld [vmem:[%s1247_s1 + $0x20] sm:$0xff]  ;;  %v80_v7 = vld [vmem:[%s1247_s1 + $0x28] sm:$0xff] }
   0x3   :  { %v756_v5 = vpack.c.bf16 %v78_v4, %v77_v2  ;;  %v760_v8 = vpack.c.bf16 %v80_v7, %v79_v6  ;;  %v11_v9 = vld [vmem:[%s1248_s0] sm:$0xff]  ;;  %v81_v11 = vld [vmem:[%s1247_s1 + $0x30] sm:$0xff]  ;;  %v82_v12 = vld [vmem:[%s1247_s1 + $0x38] sm:$0xff] }
   0x4   :  { %753 = vmatprep.subr.bf16.mxu0 %v752_v3  ;;  %784 = vmatprep.subr.bf16.mxu1 %v752_v3  ;;  %v43_v10 = vld [vmem:[%s1248_s0 + $0x100] sm:$0xff]  ;;  %v764_v13 = vpack.c.bf16 %v82_v12, %v81_v11  ;;  %v84_v15 = vld [vmem:[%s1247_s1 + $0x48] sm:$0xff]  ;;  %v85_v17 = vld [vmem:[%s1247_s1 + $0x50] sm:$0xff] }
   0x5   :  { %755 = vmatpush3.bf16.msra.mxu0 %v752_v3  ;;  %792 = vmatpush3.bf16.msra.mxu1 %v752_v3  ;;  %v83_v14 = vld [vmem:[%s1247_s1 + $0x40] sm:$0xff]  ;;  %v86_v18 = vld [vmem:[%s1247_s1 + $0x58] sm:$0xff]  ;;  %v88_v21 = vld [vmem:[%s1247_s1 + $0x68] sm:$0xff] }
   0x6   :  { %757 = vmatprep.subr.bf16.mxu0 %v756_v5  ;;  %785 = vmatprep.subr.bf16.mxu1 %v756_v5  ;;  %v768_v16 = vpack.c.bf16 %v84_v15, %v83_v14  ;;  %v772_v19 = vpack.c.bf16 %v86_v18, %v85_v17  ;;  %v87_v20 = vld [vmem:[%s1247_s1 + $0x60] sm:$0xff]  ;;  %v89_v23 = vld [vmem:[%s1247_s1 + $0x70] sm:$0xff]  ;;  %v90_v24 = vld [vmem:[%s1247_s1 + $0x78] sm:$0xff] }
   0x7   :  { %656 = vmatprep.mubr.f32.mxu0 %v11_v9  ;;  %704 = vmatprep.mubr.f32.mxu1 %v43_v10  ;;  %v776_v22 = vpack.c.bf16 %v88_v21, %v87_v20  ;;  %v780_v25 = vpack.c.bf16 %v90_v24, %v89_v23  ;;  %v12_v26 = vld [vmem:[%s1248_s0 + $0x8] sm:$0xff]  ;;  %v13_v28 = vld [vmem:[%s1248_s0 + $0x10] sm:$0xff]  ;;  %v14_v30 = vld [vmem:[%s1248_s0 + $0x18] sm:$0xff] }
   0x8   :  { %v44_v27 = vld [vmem:[%s1248_s0 + $0x108] sm:$0xff]  ;;  %v45_v29 = vld [vmem:[%s1248_s0 + $0x110] sm:$0xff]  ;;  %v46_v31 = vld [vmem:[%s1248_s0 + $0x118] sm:$0xff] }
   0x9   :  { %759 = vmatpush3.bf16.msra.mxu0 %v756_v5  ;;  %793 = vmatpush3.bf16.msra.mxu1 %v756_v5  ;;  %v15_v32 = vld [vmem:[%s1248_s0 + $0x20] sm:$0xff]  ;;  %v16_v34 = vld [vmem:[%s1248_s0 + $0x28] sm:$0xff]  ;;  %v17_v36 = vld [vmem:[%s1248_s0 + $0x30] sm:$0xff] }
   0xa   :  { %761 = vmatprep.subr.bf16.mxu0 %v760_v8  ;;  %786 = vmatprep.subr.bf16.mxu1 %v760_v8  ;;  %v47_v33 = vld [vmem:[%s1248_s0 + $0x120] sm:$0xff]  ;;  %v48_v35 = vld [vmem:[%s1248_s0 + $0x128] sm:$0xff]  ;;  %v49_v37 = vld [vmem:[%s1248_s0 + $0x130] sm:$0xff] }
   0xb   :  { %v18_v38 = vld [vmem:[%s1248_s0 + $0x38] sm:$0xff]  ;;  %v19_v40 = vld [vmem:[%s1248_s0 + $0x40] sm:$0xff]  ;;  %v20_v42 = vld [vmem:[%s1248_s0 + $0x48] sm:$0xff] }
   0xc   :  { %v50_v39 = vld [vmem:[%s1248_s0 + $0x138] sm:$0xff]  ;;  %v51_v41 = vld [vmem:[%s1248_s0 + $0x140] sm:$0xff]  ;;  %v52_v43 = vld [vmem:[%s1248_s0 + $0x148] sm:$0xff] }
   0xd   :  { %763 = vmatpush3.bf16.msra.mxu0 %v760_v8  ;;  %794 = vmatpush3.bf16.msra.mxu1 %v760_v8  ;;  %v21_v44 = vld [vmem:[%s1248_s0 + $0x50] sm:$0xff]  ;;  %v22_v46 = vld [vmem:[%s1248_s0 + $0x58] sm:$0xff]  ;;  %v23_v48 = vld [vmem:[%s1248_s0 + $0x60] sm:$0xff] }
   0xe   :  { %765 = vmatprep.subr.bf16.mxu0 %v764_v13  ;;  %787 = vmatprep.subr.bf16.mxu1 %v764_v13  ;;  %v53_v45 = vld [vmem:[%s1248_s0 + $0x150] sm:$0xff]  ;;  %v54_v47 = vld [vmem:[%s1248_s0 + $0x158] sm:$0xff]  ;;  %v55_v49 = vld [vmem:[%s1248_s0 + $0x160] sm:$0xff] }
   0xf   :  { %v24_v50 = vld [vmem:[%s1248_s0 + $0x68] sm:$0xff]  ;;  %v25_v52 = vld [vmem:[%s1248_s0 + $0x70] sm:$0xff]  ;;  %v26_v54 = vld [vmem:[%s1248_s0 + $0x78] sm:$0xff] }
  0x10   :  { %v56_v51 = vld [vmem:[%s1248_s0 + $0x168] sm:$0xff]  ;;  %v57_v53 = vld [vmem:[%s1248_s0 + $0x170] sm:$0xff]  ;;  %v58_v55 = vld [vmem:[%s1248_s0 + $0x178] sm:$0xff] }
  0x11   :  { %767 = vmatpush3.bf16.msra.mxu0 %v764_v13  ;;  %795 = vmatpush3.bf16.msra.mxu1 %v764_v13  ;;  %v27_v56 = vld [vmem:[%s1248_s0 + $0x80] sm:$0xff]  ;;  %v28_v58 = vld [vmem:[%s1248_s0 + $0x88] sm:$0xff]  ;;  %v29_v60 = vld [vmem:[%s1248_s0 + $0x90] sm:$0xff] }
  0x12   :  { %769 = vmatprep.subr.bf16.mxu0 %v768_v16  ;;  %788 = vmatprep.subr.bf16.mxu1 %v768_v16  ;;  %v59_v57 = vld [vmem:[%s1248_s0 + $0x180] sm:$0xff]  ;;  %v60_v59 = vld [vmem:[%s1248_s0 + $0x188] sm:$0xff]  ;;  %v61_v61 = vld [vmem:[%s1248_s0 + $0x190] sm:$0xff] }
  0x13   :  { %v30_v62 = vld [vmem:[%s1248_s0 + $0x98] sm:$0xff]  ;;  %v31_v0 = vld [vmem:[%s1248_s0 + $0xa0] sm:$0xff]  ;;  %v32_v2 = vld [vmem:[%s1248_s0 + $0xa8] sm:$0xff] }
  0x14   :  { %v62_v63 = vld [vmem:[%s1248_s0 + $0x198] sm:$0xff]  ;;  %v63_v1 = vld [vmem:[%s1248_s0 + $0x1a0] sm:$0xff]  ;;  %v64_v3 = vld [vmem:[%s1248_s0 + $0x1a8] sm:$0xff] }
  0x15   :  { %771 = vmatpush3.bf16.msra.mxu0 %v768_v16  ;;  %796 = vmatpush3.bf16.msra.mxu1 %v768_v16  ;;  %v33_v4 = vld [vmem:[%s1248_s0 + $0xb0] sm:$0xff]  ;;  %v34_v6 = vld [vmem:[%s1248_s0 + $0xb8] sm:$0xff]  ;;  %v35_v8 = vld [vmem:[%s1248_s0 + $0xc0] sm:$0xff] }
  0x16   :  { %773 = vmatprep.subr.bf16.mxu0 %v772_v19  ;;  %789 = vmatprep.subr.bf16.mxu1 %v772_v19  ;;  %v65_v5 = vld [vmem:[%s1248_s0 + $0x1b0] sm:$0xff]  ;;  %v66_v7 = vld [vmem:[%s1248_s0 + $0x1b8] sm:$0xff]  ;;  %v67_v9 = vld [vmem:[%s1248_s0 + $0x1c0] sm:$0xff] }
  0x17   :  { %v36_v10 = vld [vmem:[%s1248_s0 + $0xc8] sm:$0xff]  ;;  %v37_v12 = vld [vmem:[%s1248_s0 + $0xd0] sm:$0xff]  ;;  %v38_v14 = vld [vmem:[%s1248_s0 + $0xd8] sm:$0xff] }
  0x18   :  { %v68_v11 = vld [vmem:[%s1248_s0 + $0x1c8] sm:$0xff]  ;;  %v69_v13 = vld [vmem:[%s1248_s0 + $0x1d0] sm:$0xff]  ;;  %v70_v15 = vld [vmem:[%s1248_s0 + $0x1d8] sm:$0xff] }
  0x19   :  { %775 = vmatpush3.bf16.msra.mxu0 %v772_v19  ;;  %797 = vmatpush3.bf16.msra.mxu1 %v772_v19  ;;  %v39_v16 = vld [vmem:[%s1248_s0 + $0xe0] sm:$0xff]  ;;  %v40_v18 = vld [vmem:[%s1248_s0 + $0xe8] sm:$0xff]  ;;  %v41_v20 = vld [vmem:[%s1248_s0 + $0xf0] sm:$0xff] }
  0x1a   :  { %777 = vmatprep.subr.bf16.mxu0 %v776_v22  ;;  %790 = vmatprep.subr.bf16.mxu1 %v776_v22  ;;  %v71_v17 = vld [vmem:[%s1248_s0 + $0x1e0] sm:$0xff]  ;;  %v72_v19 = vld [vmem:[%s1248_s0 + $0x1e8] sm:$0xff]  ;;  %v73_v21 = vld [vmem:[%s1248_s0 + $0x1f0] sm:$0xff] }
  0x1b   :  { %v74_v23 = vld [vmem:[%s1248_s0 + $0x1f8] sm:$0xff] }
  0x1d   :  { %779 = vmatpush3.bf16.msra.mxu0 %v776_v22  ;;  %798 = vmatpush3.bf16.msra.mxu1 %v776_v22  ;;  %v42_v22 = vld [vmem:[%s1248_s0 + $0xf8] sm:$0xff] }
  0x1e   :  { %781 = vmatprep.subr.bf16.mxu0 %v780_v25  ;;  %791 = vmatprep.subr.bf16.mxu1 %v780_v25 }
  0x21   :  { %783 = vmatpush3.bf16.msra.mxu0 %v780_v25  ;;  %799 = vmatpush3.bf16.msra.mxu1 %v780_v25 }
  0x24   :  { %657 = vmatmul.mubr.f32.vlgmr.msra.gmra.mrb[0].mxu0 %v12_v26  ;;  %705 = vmatmul.mubr.f32.vlgmr.msra.gmra.mrb[0].mxu1 %v44_v27 }
  0x25   :  { %659 = vmatprep.mubr.f32.mxu0 %v13_v28  ;;  %707 = vmatprep.mubr.f32.mxu1 %v45_v29 }
  0x28   :  { %660 = vmatmul.mubr.f32.gmra.mrb[2].mxu0 %v14_v30  ;;  %708 = vmatmul.mubr.f32.gmra.mrb[2].mxu1 %v46_v31 }
  0x29   :  { %662 = vmatprep.mubr.f32.mxu0 %v15_v32  ;;  %710 = vmatprep.mubr.f32.mxu1 %v47_v33 }
  0x2c   :  { %663 = vmatmul.mubr.f32.gmra.mrb[4].mxu0 %v16_v34  ;;  %711 = vmatmul.mubr.f32.gmra.mrb[4].mxu1 %v48_v35 }
  0x2d   :  { %665 = vmatprep.mubr.f32.mxu0 %v17_v36  ;;  %713 = vmatprep.mubr.f32.mxu1 %v49_v37 }
  0x30   :  { %666 = vmatmul.mubr.f32.gmra.mrb[6].mxu0 %v18_v38  ;;  %714 = vmatmul.mubr.f32.gmra.mrb[6].mxu1 %v50_v39 }
  0x31   :  { %668 = vmatprep.mubr.f32.mxu0 %v19_v40  ;;  %716 = vmatprep.mubr.f32.mxu1 %v51_v41 }
  0x34   :  { %669 = vmatmul.mubr.f32.gmra.mrb[8].mxu0 %v20_v42  ;;  %717 = vmatmul.mubr.f32.gmra.mrb[8].mxu1 %v52_v43 }
  0x35   :  { %671 = vmatprep.mubr.f32.mxu0 %v21_v44  ;;  %719 = vmatprep.mubr.f32.mxu1 %v53_v45 }
  0x38   :  { %672 = vmatmul.mubr.f32.gmra.mrb[10].mxu0 %v22_v46  ;;  %720 = vmatmul.mubr.f32.gmra.mrb[10].mxu1 %v54_v47 }
  0x39   :  { %674 = vmatprep.mubr.f32.mxu0 %v23_v48  ;;  %722 = vmatprep.mubr.f32.mxu1 %v55_v49 }
  0x3c   :  { %675 = vmatmul.mubr.f32.gmra.mrb[12].mxu0 %v24_v50  ;;  %723 = vmatmul.mubr.f32.gmra.mrb[12].mxu1 %v56_v51 }
  0x3d   :  { %677 = vmatprep.mubr.f32.mxu0 %v25_v52  ;;  %725 = vmatprep.mubr.f32.mxu1 %v57_v53 }
  0x40   :  { %678 = vmatmul.mubr.f32.gmra.mrb[14].mxu0 %v26_v54  ;;  %726 = vmatmul.mubr.f32.gmra.mrb[14].mxu1 %v58_v55 }
  0x41   :  { %680 = vmatprep.mubr.f32.mxu0 %v27_v56  ;;  %728 = vmatprep.mubr.f32.mxu1 %v59_v57 }
  0x44   :  { %681 = vmatmul.mubr.f32.gmra.mrb[16].mxu0 %v28_v58  ;;  %729 = vmatmul.mubr.f32.gmra.mrb[16].mxu1 %v60_v59 }
  0x45   :  { %683 = vmatprep.mubr.f32.mxu0 %v29_v60  ;;  %731 = vmatprep.mubr.f32.mxu1 %v61_v61 }
  0x48   :  { %684 = vmatmul.mubr.f32.gmra.mrb[18].mxu0 %v30_v62  ;;  %732 = vmatmul.mubr.f32.gmra.mrb[18].mxu1 %v62_v63 }
  0x49   :  { %686 = vmatprep.mubr.f32.mxu0 %v31_v0  ;;  %734 = vmatprep.mubr.f32.mxu1 %v63_v1 }
  0x4c   :  { %687 = vmatmul.mubr.f32.gmra.mrb[20].mxu0 %v32_v2  ;;  %735 = vmatmul.mubr.f32.gmra.mrb[20].mxu1 %v64_v3 }
  0x4d   :  { %689 = vmatprep.mubr.f32.mxu0 %v33_v4  ;;  %737 = vmatprep.mubr.f32.mxu1 %v65_v5 }
  0x50   :  { %690 = vmatmul.mubr.f32.gmra.mrb[22].mxu0 %v34_v6  ;;  %738 = vmatmul.mubr.f32.gmra.mrb[22].mxu1 %v66_v7 }
  0x51   :  { %692 = vmatprep.mubr.f32.mxu0 %v35_v8  ;;  %740 = vmatprep.mubr.f32.mxu1 %v67_v9 }
  0x54   :  { %693 = vmatmul.mubr.f32.gmra.mrb[24].mxu0 %v36_v10  ;;  %741 = vmatmul.mubr.f32.gmra.mrb[24].mxu1 %v68_v11 }
  0x55   :  { %695 = vmatprep.mubr.f32.mxu0 %v37_v12  ;;  %743 = vmatprep.mubr.f32.mxu1 %v69_v13 }
  0x58   :  { %696 = vmatmul.mubr.f32.gmra.mrb[26].mxu0 %v38_v14  ;;  %744 = vmatmul.mubr.f32.gmra.mrb[26].mxu1 %v70_v15 }
  0x59   :  { %698 = vmatprep.mubr.f32.mxu0 %v39_v16  ;;  %746 = vmatprep.mubr.f32.mxu1 %v71_v17 }
  0x5c   :  { %699 = vmatmul.mubr.f32.gmra.mrb[28].mxu0 %v40_v18  ;;  %747 = vmatmul.mubr.f32.gmra.mrb[28].mxu1 %v72_v19 }
  0x5d   :  { %701 = vmatprep.mubr.f32.mxu0 %v41_v20  ;;  %749 = vmatprep.mubr.f32.mxu1 %v73_v21 }
  0x60   :  { %702 = vmatmul.mubr.f32.gmra.mrb[30].mxu0 %v42_v22  ;;  %750 = vmatmul.mubr.f32.gmra.mrb[30].mxu1 %v74_v23 }
  0xf7   :  { %v658_v24 = vpop.f32.mrb[0].mxu0  ;;  %v706_v25 = vpop.f32.mrb[0].mxu1 }
  0xf8   :  { %477 = vst [vmem:[%s1249_s2 + $0x8] sm:$0xff] %v658_v24  ;;  %509 = vst [vmem:[%s1249_s2 + $0x108] sm:$0xff] %v706_v25  ;;  %v157_v26 = vpop.f32.mrb[1].mxu0  ;;  %v317_v27 = vpop.f32.mrb[1].mxu1 }
  0xf9   :  { %476 = vst [vmem:[%s1249_s2] sm:$0xff] %v157_v26  ;;  %508 = vst [vmem:[%s1249_s2 + $0x100] sm:$0xff] %v317_v27 }
  0xfb   :  { %v661_v28 = vpop.f32.mrb[2].mxu0  ;;  %v709_v29 = vpop.f32.mrb[2].mxu1 }
  0xfc   :  { %479 = vst [vmem:[%s1249_s2 + $0x18] sm:$0xff] %v661_v28  ;;  %511 = vst [vmem:[%s1249_s2 + $0x118] sm:$0xff] %v709_v29  ;;  %v167_v30 = vpop.f32.mrb[3].mxu0  ;;  %v327_v31 = vpop.f32.mrb[3].mxu1 }
  0xfd   :  { %478 = vst [vmem:[%s1249_s2 + $0x10] sm:$0xff] %v167_v30  ;;  %510 = vst [vmem:[%s1249_s2 + $0x110] sm:$0xff] %v327_v31 }
  0xff   :  { %v664_v32 = vpop.f32.mrb[4].mxu0  ;;  %v712_v33 = vpop.f32.mrb[4].mxu1 }
 0x100   :  { %481 = vst [vmem:[%s1249_s2 + $0x28] sm:$0xff] %v664_v32  ;;  %513 = vst [vmem:[%s1249_s2 + $0x128] sm:$0xff] %v712_v33  ;;  %v177_v34 = vpop.f32.mrb[5].mxu0  ;;  %v337_v35 = vpop.f32.mrb[5].mxu1 }
 0x101   :  { %480 = vst [vmem:[%s1249_s2 + $0x20] sm:$0xff] %v177_v34  ;;  %512 = vst [vmem:[%s1249_s2 + $0x120] sm:$0xff] %v337_v35 }
 0x103   :  { %v667_v36 = vpop.f32.mrb[6].mxu0  ;;  %v715_v37 = vpop.f32.mrb[6].mxu1 }
 0x104   :  { %483 = vst [vmem:[%s1249_s2 + $0x38] sm:$0xff] %v667_v36  ;;  %515 = vst [vmem:[%s1249_s2 + $0x138] sm:$0xff] %v715_v37  ;;  %v187_v38 = vpop.f32.mrb[7].mxu0  ;;  %v347_v39 = vpop.f32.mrb[7].mxu1 }
 0x105   :  { %482 = vst [vmem:[%s1249_s2 + $0x30] sm:$0xff] %v187_v38  ;;  %514 = vst [vmem:[%s1249_s2 + $0x130] sm:$0xff] %v347_v39 }
 0x107   :  { %v670_v40 = vpop.f32.mrb[8].mxu0  ;;  %v718_v41 = vpop.f32.mrb[8].mxu1 }
 0x108   :  { %485 = vst [vmem:[%s1249_s2 + $0x48] sm:$0xff] %v670_v40  ;;  %517 = vst [vmem:[%s1249_s2 + $0x148] sm:$0xff] %v718_v41  ;;  %v197_v42 = vpop.f32.mrb[9].mxu0  ;;  %v357_v43 = vpop.f32.mrb[9].mxu1 }
 0x109   :  { %484 = vst [vmem:[%s1249_s2 + $0x40] sm:$0xff] %v197_v42  ;;  %516 = vst [vmem:[%s1249_s2 + $0x140] sm:$0xff] %v357_v43 }
 0x10b   :  { %v673_v44 = vpop.f32.mrb[10].mxu0  ;;  %v721_v45 = vpop.f32.mrb[10].mxu1 }
 0x10c   :  { %487 = vst [vmem:[%s1249_s2 + $0x58] sm:$0xff] %v673_v44  ;;  %519 = vst [vmem:[%s1249_s2 + $0x158] sm:$0xff] %v721_v45  ;;  %v207_v46 = vpop.f32.mrb[11].mxu0  ;;  %v367_v47 = vpop.f32.mrb[11].mxu1 }
 0x10d   :  { %486 = vst [vmem:[%s1249_s2 + $0x50] sm:$0xff] %v207_v46  ;;  %518 = vst [vmem:[%s1249_s2 + $0x150] sm:$0xff] %v367_v47 }
 0x10f   :  { %v676_v48 = vpop.f32.mrb[12].mxu0  ;;  %v724_v49 = vpop.f32.mrb[12].mxu1 }
 0x110   :  { %489 = vst [vmem:[%s1249_s2 + $0x68] sm:$0xff] %v676_v48  ;;  %521 = vst [vmem:[%s1249_s2 + $0x168] sm:$0xff] %v724_v49  ;;  %v217_v50 = vpop.f32.mrb[13].mxu0  ;;  %v377_v51 = vpop.f32.mrb[13].mxu1 }
 0x111   :  { %488 = vst [vmem:[%s1249_s2 + $0x60] sm:$0xff] %v217_v50  ;;  %520 = vst [vmem:[%s1249_s2 + $0x160] sm:$0xff] %v377_v51 }
 0x113   :  { %v679_v52 = vpop.f32.mrb[14].mxu0  ;;  %v727_v53 = vpop.f32.mrb[14].mxu1 }
 0x114   :  { %491 = vst [vmem:[%s1249_s2 + $0x78] sm:$0xff] %v679_v52  ;;  %523 = vst [vmem:[%s1249_s2 + $0x178] sm:$0xff] %v727_v53  ;;  %v227_v54 = vpop.f32.mrb[15].mxu0  ;;  %v387_v55 = vpop.f32.mrb[15].mxu1 }
 0x115   :  { %490 = vst [vmem:[%s1249_s2 + $0x70] sm:$0xff] %v227_v54  ;;  %522 = vst [vmem:[%s1249_s2 + $0x170] sm:$0xff] %v387_v55 }
 0x117   :  { %v682_v56 = vpop.f32.mrb[16].mxu0  ;;  %v730_v57 = vpop.f32.mrb[16].mxu1 }
 0x118   :  { %493 = vst [vmem:[%s1249_s2 + $0x88] sm:$0xff] %v682_v56  ;;  %525 = vst [vmem:[%s1249_s2 + $0x188] sm:$0xff] %v730_v57  ;;  %v237_v58 = vpop.f32.mrb[17].mxu0  ;;  %v397_v59 = vpop.f32.mrb[17].mxu1 }
 0x119   :  { %492 = vst [vmem:[%s1249_s2 + $0x80] sm:$0xff] %v237_v58  ;;  %524 = vst [vmem:[%s1249_s2 + $0x180] sm:$0xff] %v397_v59 }
 0x11b   :  { %v685_v60 = vpop.f32.mrb[18].mxu0  ;;  %v733_v61 = vpop.f32.mrb[18].mxu1 }
 0x11c   :  { %495 = vst [vmem:[%s1249_s2 + $0x98] sm:$0xff] %v685_v60  ;;  %527 = vst [vmem:[%s1249_s2 + $0x198] sm:$0xff] %v733_v61  ;;  %v247_v62 = vpop.f32.mrb[19].mxu0  ;;  %v407_v63 = vpop.f32.mrb[19].mxu1 }
 0x11d   :  { %494 = vst [vmem:[%s1249_s2 + $0x90] sm:$0xff] %v247_v62  ;;  %526 = vst [vmem:[%s1249_s2 + $0x190] sm:$0xff] %v407_v63 }
 0x11f   :  { %v688_v0 = vpop.f32.mrb[20].mxu0  ;;  %v736_v1 = vpop.f32.mrb[20].mxu1 }
 0x120   :  { %497 = vst [vmem:[%s1249_s2 + $0xa8] sm:$0xff] %v688_v0  ;;  %529 = vst [vmem:[%s1249_s2 + $0x1a8] sm:$0xff] %v736_v1  ;;  %v257_v2 = vpop.f32.mrb[21].mxu0  ;;  %v417_v3 = vpop.f32.mrb[21].mxu1 }
 0x121   :  { %496 = vst [vmem:[%s1249_s2 + $0xa0] sm:$0xff] %v257_v2  ;;  %528 = vst [vmem:[%s1249_s2 + $0x1a0] sm:$0xff] %v417_v3 }
 0x123   :  { %v691_v4 = vpop.f32.mrb[22].mxu0  ;;  %v739_v5 = vpop.f32.mrb[22].mxu1 }
 0x124   :  { %499 = vst [vmem:[%s1249_s2 + $0xb8] sm:$0xff] %v691_v4  ;;  %531 = vst [vmem:[%s1249_s2 + $0x1b8] sm:$0xff] %v739_v5  ;;  %v267_v6 = vpop.f32.mrb[23].mxu0  ;;  %v427_v7 = vpop.f32.mrb[23].mxu1 }
 0x125   :  { %498 = vst [vmem:[%s1249_s2 + $0xb0] sm:$0xff] %v267_v6  ;;  %530 = vst [vmem:[%s1249_s2 + $0x1b0] sm:$0xff] %v427_v7 }
 0x127   :  { %v694_v8 = vpop.f32.mrb[24].mxu0  ;;  %v742_v9 = vpop.f32.mrb[24].mxu1 }
 0x128   :  { %501 = vst [vmem:[%s1249_s2 + $0xc8] sm:$0xff] %v694_v8  ;;  %533 = vst [vmem:[%s1249_s2 + $0x1c8] sm:$0xff] %v742_v9  ;;  %v277_v10 = vpop.f32.mrb[25].mxu0  ;;  %v437_v11 = vpop.f32.mrb[25].mxu1 }
 0x129   :  { %500 = vst [vmem:[%s1249_s2 + $0xc0] sm:$0xff] %v277_v10  ;;  %532 = vst [vmem:[%s1249_s2 + $0x1c0] sm:$0xff] %v437_v11 }
 0x12b   :  { %v697_v12 = vpop.f32.mrb[26].mxu0  ;;  %v745_v13 = vpop.f32.mrb[26].mxu1 }
 0x12c   :  { %503 = vst [vmem:[%s1249_s2 + $0xd8] sm:$0xff] %v697_v12  ;;  %535 = vst [vmem:[%s1249_s2 + $0x1d8] sm:$0xff] %v745_v13  ;;  %v287_v14 = vpop.f32.mrb[27].mxu0  ;;  %v447_v15 = vpop.f32.mrb[27].mxu1 }
 0x12d   :  { %502 = vst [vmem:[%s1249_s2 + $0xd0] sm:$0xff] %v287_v14  ;;  %534 = vst [vmem:[%s1249_s2 + $0x1d0] sm:$0xff] %v447_v15 }
 0x12f   :  { %v700_v16 = vpop.f32.mrb[28].mxu0  ;;  %v748_v17 = vpop.f32.mrb[28].mxu1 }
 0x130   :  { %505 = vst [vmem:[%s1249_s2 + $0xe8] sm:$0xff] %v700_v16  ;;  %537 = vst [vmem:[%s1249_s2 + $0x1e8] sm:$0xff] %v748_v17  ;;  %v297_v18 = vpop.f32.mrb[29].mxu0  ;;  %v457_v19 = vpop.f32.mrb[29].mxu1 }
 0x131   :  { %504 = vst [vmem:[%s1249_s2 + $0xe0] sm:$0xff] %v297_v18  ;;  %536 = vst [vmem:[%s1249_s2 + $0x1e0] sm:$0xff] %v457_v19 }
 0x133   :  { %v703_v20 = vpop.f32.mrb[30].mxu0  ;;  %v751_v21 = vpop.f32.mrb[30].mxu1 }
 0x134   :  { %507 = vst [vmem:[%s1249_s2 + $0xf8] sm:$0xff] %v703_v20  ;;  %539 = vst [vmem:[%s1249_s2 + $0x1f8] sm:$0xff] %v751_v21  ;;  %v307_v22 = vpop.f32.mrb[31].mxu0  ;;  %v467_v23 = vpop.f32.mrb[31].mxu1 }
 0x135   :  { %506 = vst [vmem:[%s1249_s2 + $0xf0] sm:$0xff] %v307_v22  ;;  %538 = vst [vmem:[%s1249_s2 + $0x1f0] sm:$0xff] %v467_v23 }

</bundles_post_ra>
